<compile_context>
chip_gen: v7x
topology: tpu7x:2x2x1
jax: 0.10.0
libtpu: 0.0.40
codegen_flags: <defaults>
</compile_context>

<pallas_src>
import math
import functools

import jax
import jax.numpy as jnp
from jax.experimental import pallas as pl
from jax.experimental.pallas import tpu as pltpu


def _round_up(x, m):
    return ((x + m - 1) // m) * m


def _softplus(x):
    # PyTorch F.softplus (beta=1), numerically stable.
    return jnp.maximum(x, 0.0) + jnp.log1p(jnp.exp(-jnp.abs(x)))


def _ppo_head_kernel(layer_num, std_lo, std_hi, out_pad, *refs):
    """refs = (obs, W0, b0, ..., W_{L-1}, b_{L-1}, Wcat, bcat, mean_out, std_out)."""
    obs_ref = refs[0]
    hidden_refs = refs[1 : 1 + 2 * layer_num]
    wcat_ref, bcat_ref = refs[1 + 2 * layer_num : 3 + 2 * layer_num]
    mean_ref, std_ref = refs[3 + 2 * layer_num :]

    # Compute dtype follows the (pre-cast) weight dtype: f32 or bf16.
    cdt = hidden_refs[0].dtype

    x = obs_ref[...].astype(cdt)

    # MLP trunk: Linear -> Tanh, unrolled (biases loaded once per layer;
    # broadcast add stays hoisted because the loop is a Python unroll).
    for i in range(layer_num):
        w = hidden_refs[2 * i][...]
        b = hidden_refs[2 * i + 1][...].astype(jnp.float32)  # bias kept f32
        acc = jnp.dot(x, w, preferred_element_type=jnp.float32) + b
        x = jnp.tanh(acc).astype(cdt)

    # Fused mean/std head: one MXU matmul, split the lane-aligned halves.
    y = (
        jnp.dot(x, wcat_ref[...], preferred_element_type=jnp.float32)
        + bcat_ref[...].astype(jnp.float32)
    )
    mean = jnp.tanh(y[:, :out_pad])
    std = jnp.clip(_softplus(y[:, out_pad:]), std_lo, std_hi)

    mean_ref[...] = mean.astype(mean_ref.dtype)
    std_ref[...] = std.astype(std_ref.dtype)


def ppo_mlp_head_forward(
    obs,
    params,
    layer_num,
    log_std_min,
    log_std_max,
    *,
    compute_dtype=jnp.float32,
    block_b=512,
):
    """Run the PPOMLPHead forward pass in a single Pallas kernel.

    params: dict with keys 'W0','b0',...,'W{L-1}','b{L-1}','Wmean','bmean',
    'Wstd','bstd'; weights as [in, out], biases as [1, out].
    compute_dtype: jnp.float32 (exact) or jnp.bfloat16 (faster on v6e/v7x;
    accumulation and epilogue stay in f32).
    """
    B, input_dim = obs.shape
    hidden_dim = params["W0"].shape[1]
    out_dim = params["Wmean"].shape[1]

    # Lane / sublane padding.
    in_pad = _round_up(input_dim, 128)
    hid_pad = _round_up(hidden_dim, 128)
    out_pad = _round_up(out_dim, 128)

    tb = _round_up(min(block_b, _round_up(B, 8)), 8)
    b_pad = _round_up(B, tb)
    grid = (b_pad // tb,)

    c_itemsize = jnp.dtype(compute_dtype).itemsize

    def pad2(a, rows, cols):
        return jnp.pad(a, ((0, rows - a.shape[0]), (0, cols - a.shape[1])))

    # --- pack inputs (padding + dtype casts happen once, here) -------------
    obs_p = pad2(obs.astype(jnp.float32), b_pad, in_pad).astype(compute_dtype)

    const_map = lambda i: (0, 0)
    flat_inputs = [obs_p]
    in_specs = [pl.BlockSpec((tb, in_pad), lambda i: (i, 0))]

    for li in range(layer_num):
        r_pad = in_pad if li == 0 else hid_pad
        w_p = pad2(params[f"W{li}"], r_pad, hid_pad).astype(compute_dtype)
        b_p = pad2(params[f"b{li}"], 1, hid_pad).astype(jnp.float32)
        flat_inputs += [w_p, b_p]
        in_specs += [
            pl.BlockSpec((r_pad, hid_pad), const_map),
            pl.BlockSpec((1, hid_pad), const_map),
        ]

    # Fused (mean | std) head weights: [hid_pad, 2*out_pad].
    wcat = jnp.concatenate(
        [pad2(params["Wmean"], hid_pad, out_pad), pad2(params["Wstd"], hid_pad, out_pad)],
        axis=1,
    ).astype(compute_dtype)
    bcat = jnp.concatenate(
        [pad2(params["bmean"], 1, out_pad), pad2(params["bstd"], 1, out_pad)], axis=1
    ).astype(jnp.float32)
    flat_inputs += [wcat, bcat]
    in_specs += [
        pl.BlockSpec((hid_pad, 2 * out_pad), const_map),
        pl.BlockSpec((1, 2 * out_pad), const_map),
    ]

    out_specs = (
        pl.BlockSpec((tb, out_pad), lambda i: (i, 0)),
        pl.BlockSpec((tb, out_pad), lambda i: (i, 0)),
    )
    out_shape = (
        jax.ShapeDtypeStruct((b_pad, out_pad), jnp.float32),
        jax.ShapeDtypeStruct((b_pad, out_pad), jnp.float32),
    )

    # --- VMEM budget & cost estimate ---------------------------------------
    weight_bytes = (
        in_pad * hid_pad * c_itemsize
        + hid_pad * 4
        + (layer_num - 1) * (hid_pad * hid_pad * c_itemsize + hid_pad * 4)
        + hid_pad * 2 * out_pad * c_itemsize
        + 2 * out_pad * 4
    )
    act_tile_bytes = tb * in_pad * c_itemsize + 2 * tb * out_pad * 4
    needed = 2 * (weight_bytes + act_tile_bytes) + (4 << 20)
    # Cap at 64 MiB so the request is always legal on v7x (64 MiB physical).
    vmem_limit = int(min(max(needed, 32 << 20), 64 << 20))
    # TODO(synk): for hidden_dim >= ~2048 in f32 the resident-weight strategy can
    # exceed v7x's 64 MiB VMEM; add a K/N tiling grid axis over hidden_dim there.

    flops = 2 * b_pad * (
        in_pad * hid_pad
        + (layer_num - 1) * hid_pad * hid_pad
        + hid_pad * 2 * out_pad
    )
    transcendentals = b_pad * (layer_num * hid_pad + 3 * out_pad)
    bytes_accessed = (
        b_pad * in_pad * c_itemsize + weight_bytes + 2 * b_pad * out_pad * 4
    )

    std_lo = float(math.exp(log_std_min))
    std_hi = float(math.exp(log_std_max))
    kernel = functools.partial(_ppo_head_kernel, layer_num, std_lo, std_hi, out_pad)

    mean_p, std_p = pl.pallas_call(
        kernel,
        grid=grid,
        in_specs=in_specs,
        out_specs=out_specs,
        out_shape=out_shape,
        compiler_params=pltpu.CompilerParams(
            dimension_semantics=("parallel",),
            vmem_limit_bytes=vmem_limit,
        ),
        cost_estimate=pl.CostEstimate(
            flops=flops,
            transcendentals=transcendentals,
            bytes_accessed=bytes_accessed,
        ),
    )(*flat_inputs)

    # Strip padding.
    return mean_p[:B, :out_dim], std_p[:B, :out_dim]


def init_params(key, input_dim, hidden_dim, output_dim, layer_num):
    """Deterministic init mimicking nn.Linear's default U(-1/sqrt(fan_in), +1/sqrt(fan_in))."""
    params = {}

    def linear(k, fan_in, fan_out):
        kw, kb = jax.random.split(k)
        bound = 1.0 / math.sqrt(fan_in)
        w = jax.random.uniform(kw, (fan_in, fan_out), jnp.float32, -bound, bound)
        b = jax.random.uniform(kb, (1, fan_out), jnp.float32, -bound, bound)
        return w, b

    keys = jax.random.split(key, layer_num + 2)
    for i in range(layer_num):
        fan_in = input_dim if i == 0 else hidden_dim
        params[f"W{i}"], params[f"b{i}"] = linear(keys[i], fan_in, hidden_dim)
    params["Wmean"], params["bmean"] = linear(keys[layer_num], hidden_dim, output_dim)
    params["Wstd"], params["bstd"] = linear(keys[layer_num + 1], hidden_dim, output_dim)
    return params


if __name__ == "__main__":
    # Small config consistent with the module's constructor.
    input_dim = 16
    mlp_hidden_dim = 32
    output_dim = 8
    layer_num = 2
    log_std_min = -20.0
    log_std_max = 2.0
    batch = 8

    key = jax.random.PRNGKey(0)
    k_obs, k_params = jax.random.split(key)

    obs = jax.random.normal(k_obs, (batch, input_dim), jnp.float32)
    params = init_params(k_params, input_dim, mlp_hidden_dim, output_dim, layer_num)

    # Pure-JAX reference.
    x = obs
    for i in range(layer_num):
        x = jnp.tanh(x @ params[f"W{i}"] + params[f"b{i}"])
    ref_mean = jnp.tanh(x @ params["Wmean"] + params["bmean"])
    ref_std = jnp.clip(
        jax.nn.softplus(x @ params["Wstd"] + params["bstd"]),
        math.exp(log_std_min),
        math.exp(log_std_max),
    )

    # Exact f32 path.
    mean, std = ppo_mlp_head_forward(
        obs, params, layer_num, log_std_min, log_std_max, compute_dtype=jnp.float32
    )
    jax.block_until_ready((mean, std))
    assert mean.shape == (batch, output_dim) and std.shape == (batch, output_dim)
    assert jnp.allclose(mean, ref_mean, atol=1e-5, rtol=1e-5)
    assert jnp.allclose(std, ref_std, atol=1e-5, rtol=1e-5)

    # bf16 compute path (v6e/v7x optimization); f32 accumulation bounds the error.
    mean_bf, std_bf = ppo_mlp_head_forward(
        obs, params, layer_num, log_std_min, log_std_max, compute_dtype=jnp.bfloat16
    )
    jax.block_until_ready((mean_bf, std_bf))
    assert jnp.allclose(mean_bf, ref_mean, atol=1e-1, rtol=1e-1)
    assert jnp.allclose(std_bf, ref_std, atol=1e-1, rtol=1e-1)

    print("KERNEL_OK")
</pallas_src>

<mosaic_0001>
module attributes {stable_mosaic.version = 11 : i64} {
  func.func @_ppo_head_kernel(%arg0: i32, %arg1: memref<8x128xf32, #tpu.memory_space<vmem>>, %arg2: memref<128x128xf32, #tpu.memory_space<vmem>>, %arg3: memref<1x128xf32, #tpu.memory_space<vmem>>, %arg4: memref<128x128xf32, #tpu.memory_space<vmem>>, %arg5: memref<1x128xf32, #tpu.memory_space<vmem>>, %arg6: memref<128x256xf32, #tpu.memory_space<vmem>>, %arg7: memref<1x256xf32, #tpu.memory_space<vmem>>, %arg8: memref<8x128xf32, #tpu.memory_space<vmem>>, %arg9: memref<8x128xf32, #tpu.memory_space<vmem>>) attributes {dimension_semantics = [#tpu.dimension_semantics<parallel>], iteration_bounds = array<i64: 1>, scalar_prefetch = 0 : i64, scratch_operands = 0 : i64, tpu.core_type = #tpu.core_type<tc>, window_params = [{transform_indices = @transform_0, window_bounds = array<i64: 8, 128>}, {pipeline_mode = #tpu.pipeline_mode<synchronous>, transform_indices = @transform_1, window_bounds = array<i64: 128, 128>}, {pipeline_mode = #tpu.pipeline_mode<synchronous>, transform_indices = @transform_2, window_bounds = array<i64: 1, 128>}, {pipeline_mode = #tpu.pipeline_mode<synchronous>, transform_indices = @transform_3, window_bounds = array<i64: 128, 128>}, {pipeline_mode = #tpu.pipeline_mode<synchronous>, transform_indices = @transform_4, window_bounds = array<i64: 1, 128>}, {pipeline_mode = #tpu.pipeline_mode<synchronous>, transform_indices = @transform_5, window_bounds = array<i64: 128, 256>}, {pipeline_mode = #tpu.pipeline_mode<synchronous>, transform_indices = @transform_6, window_bounds = array<i64: 1, 256>}, {transform_indices = @transform_7, window_bounds = array<i64: 8, 128>}, {transform_indices = @transform_8, window_bounds = array<i64: 8, 128>}]} {
    %c0 = arith.constant 0 : index
    %c0_0 = arith.constant 0 : index
    %0 = vector.load %arg1[%c0, %c0_0] : memref<8x128xf32, #tpu.memory_space<vmem>>, vector<8x128xf32>
    %c0_1 = arith.constant 0 : index
    %c0_2 = arith.constant 0 : index
    %1 = vector.load %arg2[%c0_1, %c0_2] : memref<128x128xf32, #tpu.memory_space<vmem>>, vector<128x128xf32>
    %c0_3 = arith.constant 0 : index
    %c0_4 = arith.constant 0 : index
    %2 = vector.load %arg3[%c0_3, %c0_4] : memref<1x128xf32, #tpu.memory_space<vmem>>, vector<1x128xf32>
    %cst = arith.constant dense<0.000000e+00> : vector<8x128xf32>
    %3 = tpu.matmul %0, %1, %cst {dimension_numbers = #tpu.dot_dimension_numbers<[1], [0], [0], [1], [0, 0, 1, 1], [], []>} : vector<8x128xf32>, vector<128x128xf32>, vector<8x128xf32> -> vector<8x128xf32>
    %4 = vector.broadcast %2 : vector<1x128xf32> to vector<8x128xf32>
    %5 = arith.addf %3, %4 : vector<8x128xf32>
    %6 = math.tanh %5 : vector<8x128xf32>
    %c0_5 = arith.constant 0 : index
    %c0_6 = arith.constant 0 : index
    %7 = vector.load %arg4[%c0_5, %c0_6] : memref<128x128xf32, #tpu.memory_space<vmem>>, vector<128x128xf32>
    %c0_7 = arith.constant 0 : index
    %c0_8 = arith.constant 0 : index
    %8 = vector.load %arg5[%c0_7, %c0_8] : memref<1x128xf32, #tpu.memory_space<vmem>>, vector<1x128xf32>
    %cst_9 = arith.constant dense<0.000000e+00> : vector<8x128xf32>
    %9 = tpu.matmul %6, %7, %cst_9 {dimension_numbers = #tpu.dot_dimension_numbers<[1], [0], [0], [1], [0, 0, 1, 1], [], []>} : vector<8x128xf32>, vector<128x128xf32>, vector<8x128xf32> -> vector<8x128xf32>
    %10 = vector.broadcast %8 : vector<1x128xf32> to vector<8x128xf32>
    %11 = arith.addf %9, %10 : vector<8x128xf32>
    %12 = math.tanh %11 : vector<8x128xf32>
    %c0_10 = arith.constant 0 : index
    %c0_11 = arith.constant 0 : index
    %13 = vector.load %arg6[%c0_10, %c0_11] : memref<128x256xf32, #tpu.memory_space<vmem>>, vector<128x256xf32>
    %cst_12 = arith.constant dense<0.000000e+00> : vector<8x256xf32>
    %14 = tpu.matmul %12, %13, %cst_12 {dimension_numbers = #tpu.dot_dimension_numbers<[1], [0], [0], [1], [0, 0, 1, 1], [], []>} : vector<8x128xf32>, vector<128x256xf32>, vector<8x256xf32> -> vector<8x256xf32>
    %c0_13 = arith.constant 0 : index
    %c0_14 = arith.constant 0 : index
    %15 = vector.load %arg7[%c0_13, %c0_14] : memref<1x256xf32, #tpu.memory_space<vmem>>, vector<1x256xf32>
    %16 = vector.broadcast %15 : vector<1x256xf32> to vector<8x256xf32>
    %17 = arith.addf %14, %16 : vector<8x256xf32>
    %18 = vector.extract_strided_slice %17 {offsets = [0, 0], sizes = [8, 128], strides = [1, 1]} : vector<8x256xf32> to vector<8x128xf32>
    %19 = math.tanh %18 : vector<8x128xf32>
    %20 = vector.extract_strided_slice %17 {offsets = [0, 128], sizes = [8, 128], strides = [1, 1]} : vector<8x256xf32> to vector<8x128xf32>
    %cst_15 = arith.constant 0.000000e+00 : f32
    %21 = vector.broadcast %cst_15 : f32 to vector<8x128xf32>
    %22 = arith.maximumf %20, %21 : vector<8x128xf32>
    %23 = math.absf %20 : vector<8x128xf32>
    %cst_16 = arith.constant 0.000000e+00 : f32
    %24 = vector.broadcast %cst_16 : f32 to vector<8x128xf32>
    %25 = arith.subf %24, %23 : vector<8x128xf32>
    %26 = math.exp %25 : vector<8x128xf32>
    %27 = math.log1p %26 : vector<8x128xf32>
    %28 = arith.addf %22, %27 : vector<8x128xf32>
    %cst_17 = arith.constant 2.06115369E-9 : f32
    %cst_18 = arith.constant 7.3890562 : f32
    %29 = vector.broadcast %cst_17 : f32 to vector<8x128xf32>
    %30 = arith.maximumf %29, %28 : vector<8x128xf32>
    %31 = vector.broadcast %cst_18 : f32 to vector<8x128xf32>
    %32 = arith.minimumf %31, %30 : vector<8x128xf32>
    %c0_19 = arith.constant 0 : index
    %c0_20 = arith.constant 0 : index
    %33 = vector.load %arg8[%c0_19, %c0_20] : memref<8x128xf32, #tpu.memory_space<vmem>>, vector<8x128xf32>
    tpu.vector_store %arg8[%c0_19, %c0_20], %19 {strides = array<i32>} : memref<8x128xf32, #tpu.memory_space<vmem>>, vector<8x128xf32>,
    %c0_21 = arith.constant 0 : index
    %c0_22 = arith.constant 0 : index
    %34 = vector.load %arg9[%c0_21, %c0_22] : memref<8x128xf32, #tpu.memory_space<vmem>>, vector<8x128xf32>
    tpu.vector_store %arg9[%c0_21, %c0_22], %32 {strides = array<i32>} : memref<8x128xf32, #tpu.memory_space<vmem>>, vector<8x128xf32>,
    return
  }
  func.func @transform_0(%arg0: i32) -> (i32, i32) {
    %c0_i32 = arith.constant 0 : i32
    %c0_i32_0 = arith.constant 0 : i32
    return %arg0, %c0_i32 : i32, i32
  }
  func.func @transform_1(%arg0: i32) -> (i32, i32) {
    %c0_i32 = arith.constant 0 : i32
    %c0_i32_0 = arith.constant 0 : i32
    %c0_i32_1 = arith.constant 0 : i32
    return %c0_i32, %c0_i32_0 : i32, i32
  }
  func.func @transform_2(%arg0: i32) -> (i32, i32) {
    %c0_i32 = arith.constant 0 : i32
    %c0_i32_0 = arith.constant 0 : i32
    %c0_i32_1 = arith.constant 0 : i32
    return %c0_i32, %c0_i32_0 : i32, i32
  }
  func.func @transform_3(%arg0: i32) -> (i32, i32) {
    %c0_i32 = arith.constant 0 : i32
    %c0_i32_0 = arith.constant 0 : i32
    %c0_i32_1 = arith.constant 0 : i32
    return %c0_i32, %c0_i32_0 : i32, i32
  }
  func.func @transform_4(%arg0: i32) -> (i32, i32) {
    %c0_i32 = arith.constant 0 : i32
    %c0_i32_0 = arith.constant 0 : i32
    %c0_i32_1 = arith.constant 0 : i32
    return %c0_i32, %c0_i32_0 : i32, i32
  }
  func.func @transform_5(%arg0: i32) -> (i32, i32) {
    %c0_i32 = arith.constant 0 : i32
    %c0_i32_0 = arith.constant 0 : i32
    %c0_i32_1 = arith.constant 0 : i32
    return %c0_i32, %c0_i32_0 : i32, i32
  }
  func.func @transform_6(%arg0: i32) -> (i32, i32) {
    %c0_i32 = arith.constant 0 : i32
    %c0_i32_0 = arith.constant 0 : i32
    %c0_i32_1 = arith.constant 0 : i32
    return %c0_i32, %c0_i32_0 : i32, i32
  }
  func.func @transform_7(%arg0: i32) -> (i32, i32) {
    %c0_i32 = arith.constant 0 : i32
    %c0_i32_0 = arith.constant 0 : i32
    return %arg0, %c0_i32 : i32, i32
  }
  func.func @transform_8(%arg0: i32) -> (i32, i32) {
    %c0_i32 = arith.constant 0 : i32
    %c0_i32_0 = arith.constant 0 : i32
    return %arg0, %c0_i32 : i32, i32
  }
}

</mosaic_0001>

<bundles_post_ra>
// kernel: tpu_custom_call.1
= control target key start
LH: loop header
LB: loop body
LE: loop exit
PB: predicated region body
PF: predicated region fallthrough
CT: control target
= control target key end

     0   :  { %14 = vsyncpa [#allocation3], 0  ;;  %s953_s0 = inlined_call_operand.hbm [shape: f32[8,128], index: 0, kind: input, shape index: {}]   ;;  %s954_s1 = inlined_call_operand.hbm [shape: f32[128,128], index: 1, kind: input, shape index: {}]   ;;  %s955_s2 = inlined_call_operand.vmem [shape: f32[1,128], index: 2, kind: input, shape index: {}]   ;;  %s956_s3 = inlined_call_operand.hbm [shape: f32[128,128], index: 3, kind: input, shape index: {}]   ;;  %s957_s4 = inlined_call_operand.vmem [shape: f32[1,128], index: 4, kind: input, shape index: {}]   ;;  %s958_s5 = inlined_call_operand.hbm [shape: f32[128,256], index: 5, kind: input, shape index: {}]   ;;  %s959_s6 = inlined_call_operand.vmem [shape: f32[1,256], index: 6, kind: input, shape index: {}]   ;;  %s960_s7 = inlined_call_operand.hbm [shape: f32[8,128], index: 7, kind: output, shape index: {0}]   ;;  %s961_s8 = inlined_call_operand.hbm [shape: f32[8,128], index: 8, kind: output, shape index: {1}]  }
   0x1   :  { %15 = vsyncpa [#allocation6], 0 }
   0x2   :  { %16 = vsyncpa [#allocation9], 0 }
   0x3   :  { %17 = vsyncpa [#allocation4], 0 }
   0x4   :  { %18 = vsyncpa [#allocation12], 0  ;;  %s789_s27 = smov [#allocation5]   ;;  %s647_s9 = scalar_lea.hbm %s954_s1, 2048 }
   0x5   :  { %s34_s28 = sshll.u32 %s789_s27, 4  ;;  %p648_p0 = scmp.ne.s32.totalorder %s954_s1, %s647_s9  ;;  %s35_s28 = int_to_ptr.vmem [resolvable:$true] %s34_s28 }
   0x6   :  { %p651_p1 = scmp.lt.u32.totalorder %s647_s9, %s954_s1 }
   0x8   :  { %p653_p2 = pnand %p651_p1, %p648_p0 }
   0xa   :  { %656 = shalt.err (!%p653_p2)
}
   0xb   :  { %s657_s14 = scalar_lea.vmem %s35_s28, 2048  ;;  %p662_p4 = scmp.lt.s32.totalorder %s35_s28, %s35_s28 }
   0xc   :  { %p658_p3 = scmp.ne.s32.totalorder %s35_s28, %s657_s14  ;;  %p663_p5 = scmp.lt.s32.totalorder %s657_s14, %s657_s14 }
   0xe   :  { %p664_p6 = por %p663_p5, %p662_p4 }
  0x10   :  { %p665_p7 = pnand %p664_p6, %p658_p3 }
  0x12   :  { %668 = shalt.err (!%p665_p7)
}
  0x13   :  { %s790_s15 = smov 128   ;;  %s791_s16 = smov 8  }
  0x14   :  { %40 = dma.hbm_to_vmem [thread:$0]  %s954_s1, 2048, %s35_s28, [#allocation6], %s790_s15, %s790_s15, %s791_s16  }
  0x15   :  { %s792_s19 = smov [#allocation2]   ;;  %s793_s21 = smov [#allocation7]  }
  0x16   :  { %s25_s20 = sshll.u32 %s792_s19, 4  ;;  %s48_s22 = sshll.u32 %s793_s21, 4  ;;  %s26_s20 = int_to_ptr.vmem [resolvable:$true] %s25_s20  ;;  %s49_s22 = int_to_ptr.vmem [resolvable:$true] %s48_s22 }
  0x17   :  { %s669_s25 = scalar_lea.hbm %s953_s0, 128 }
  0x18   :  { %p670_p8 = scmp.ne.s32.totalorder %s953_s0, %s669_s25  ;;  %p673_p9 = scmp.lt.u32.totalorder %s669_s25, %s953_s0 }
  0x1a   :  { %p675_p10 = pnand %p673_p9, %p670_p8 }
  0x1c   :  { %678 = shalt.err (!%p675_p10)
}
  0x1d   :  { %s679_s1 = scalar_lea.vmem %s26_s20, 128  ;;  %p684_p12 = scmp.lt.s32.totalorder %s26_s20, %s26_s20 }
  0x1e   :  { %p680_p11 = scmp.ne.s32.totalorder %s26_s20, %s679_s1  ;;  %p685_p13 = scmp.lt.s32.totalorder %s679_s1, %s679_s1 }
  0x20   :  { %p686_p0 = por %p685_p13, %p684_p12 }
  0x22   :  { %p687_p1 = pnand %p686_p0, %p680_p11 }
  0x24   :  { %690 = shalt.err (!%p687_p1)
}
  0x25   :  { %28 = dma.hbm_to_vmem [thread:$0]  %s953_s0, 128, %s26_s20, [#allocation3]  }
  0x26   :  { %s691_s12 = scalar_lea.hbm %s956_s3, 2048 }
  0x27   :  { %p692_p2 = scmp.ne.s32.totalorder %s956_s3, %s691_s12  ;;  %p695_p3 = scmp.lt.u32.totalorder %s691_s12, %s956_s3 }
  0x29   :  { %p697_p4 = pnand %p695_p3, %p692_p2 }
  0x2b   :  { %700 = shalt.err (!%p697_p4)
}
  0x2c   :  { %s701_s19 = scalar_lea.vmem %s49_s22, 2048  ;;  %p706_p6 = scmp.lt.s32.totalorder %s49_s22, %s49_s22 }
  0x2d   :  { %p702_p5 = scmp.ne.s32.totalorder %s49_s22, %s701_s19  ;;  %p707_p7 = scmp.lt.s32.totalorder %s701_s19, %s701_s19 }
  0x2f   :  { %p708_p8 = por %p707_p7, %p706_p6 }
  0x31   :  { %p709_p9 = pnand %p708_p8, %p702_p5 }
  0x33   :  { %712 = shalt.err (!%p709_p9)
}
  0x34   :  { %54 = dma.hbm_to_vmem [thread:$0]  %s956_s3, 2048, %s49_s22, [#allocation6], %s790_s15, %s790_s15, %s791_s16  }
  0x35   :  { %s794_s21 = smov [#allocation8]   ;;  %s713_s26 = scalar_lea.hbm %s958_s5, 4096 }
  0x36   :  { %s62_s23 = sshll.u32 %s794_s21, 4  ;;  %p714_p10 = scmp.ne.s32.totalorder %s958_s5, %s713_s26  ;;  %s63_s23 = int_to_ptr.vmem [resolvable:$true] %s62_s23 }
  0x37   :  { %p717_p11 = scmp.lt.u32.totalorder %s713_s26, %s958_s5 }
  0x39   :  { %p719_p12 = pnand %p717_p11, %p714_p10 }
  0x3b   :  { %722 = shalt.err (!%p719_p12)
}
  0x3c   :  { %s723_s28 = scalar_lea.vmem %s63_s23, 4096  ;;  %p728_p0 = scmp.lt.s32.totalorder %s63_s23, %s63_s23 }
  0x3d   :  { %p724_p13 = scmp.ne.s32.totalorder %s63_s23, %s723_s28  ;;  %p729_p1 = scmp.lt.s32.totalorder %s723_s28, %s723_s28 }
  0x3f   :  { %p730_p2 = por %p729_p1, %p728_p0 }
  0x41   :  { %p731_p3 = pnand %p730_p2, %p724_p13 }
  0x43   :  { %734 = shalt.err (!%p731_p3)
}
  0x44   :  { %s795_s3 = smov 256   ;;  %s796_s15 = smov 16  }
  0x45   :  { %68 = dma.hbm_to_vmem [thread:$0]  %s958_s5, 4096, %s63_s23, [#allocation9], %s795_s3, %s795_s3, %s796_s15  }
  0x46   :  { %779 = dma.done.wait [#allocation3], 128  }
  0x47   :  { %780 = vsyncadd [#allocation3], 4294967168 }
  0x48   :  { %781 = dma.done.wait [#allocation6], 4096  }
  0x49   :  { %782 = vsyncadd [#allocation6], 4294963200 }
  0x4a   :  { %783 = dma.done.wait [#allocation9], 4096  }
  0x4b   :  { %784 = vsyncadd [#allocation9], 4294963200  ;;  %v797_v0 = vmov 0.0|0.0   ;;  %vm798_vm0 = vmmov 0   ;;  %v799_v1 = vmov 0.0   ;;  %v84_v2 = vld [vmem:[#allocation5] sm:$0xff] }
  0x4c   :  { %544 = vmatprep.subr.bf16.mxu0 %v797_v0  ;;  %506 = vmatprep.mubr.msk.f32.mxu0 %vm798_vm0, %v799_v1  ;;  %v85_v3 = vld [vmem:[#allocation5 + $0x8] sm:$0xff]  ;;  %v86_v4 = vld [vmem:[#allocation5 + $0x10] sm:$0xff]  ;;  %v87_v6 = vld [vmem:[#allocation5 + $0x18] sm:$0xff] }
  0x4d   :  { %568 = vmatprep.subr.bf16.mxu1 %v797_v0  ;;  %541 = vmatprep.mubr.msk.f32.mxu1 %vm798_vm0, %v799_v1  ;;  %v545_v5 = vpack.c.bf16 %v85_v3, %v84_v2  ;;  %v548_v7 = vpack.c.bf16 %v87_v6, %v86_v4  ;;  %v88_v8 = vld [vmem:[#allocation5 + $0x20] sm:$0xff]  ;;  %v89_v9 = vld [vmem:[#allocation5 + $0x28] sm:$0xff]  ;;  %v180_v12 = vld [vmem:[#allocation7 + $0x10] sm:$0xff] }
  0x4e   :  { %v178_v10 = vld [vmem:[#allocation7] sm:$0xff]  ;;  %v179_v11 = vld [vmem:[#allocation7 + $0x8] sm:$0xff]  ;;  %v181_v13 = vld [vmem:[#allocation7 + $0x18] sm:$0xff]  ;;  %v551_v14 = vpack.c.bf16 %v89_v9, %v88_v8 }
  0x4f   :  { %546 = vmatpush3.bf16.msra.mxu0 %v545_v5  ;;  %v569_v15 = vpack.c.bf16 %v179_v11, %v178_v10  ;;  %v90_v16 = vld [vmem:[#allocation5 + $0x30] sm:$0xff]  ;;  %v91_v17 = vld [vmem:[#allocation5 + $0x38] sm:$0xff]  ;;  %v572_v18 = vpack.c.bf16 %v181_v13, %v180_v12  ;;  %v182_v19 = vld [vmem:[#allocation7 + $0x20] sm:$0xff] }
  0x50   :  { %547 = vmatprep.subr.bf16.mxu0 %v797_v0  ;;  %v183_v20 = vld [vmem:[#allocation7 + $0x28] sm:$0xff]  ;;  %v554_v21 = vpack.c.bf16 %v91_v17, %v90_v16  ;;  %v92_v22 = vld [vmem:[#allocation5 + $0x40] sm:$0xff]  ;;  %v184_v25 = vld [vmem:[#allocation7 + $0x30] sm:$0xff] }
  0x51   :  { %570 = vmatpush3.bf16.msra.mxu1 %v569_v15  ;;  %v93_v23 = vld [vmem:[#allocation5 + $0x48] sm:$0xff]  ;;  %v575_v24 = vpack.c.bf16 %v183_v20, %v182_v19  ;;  %v185_v26 = vld [vmem:[#allocation7 + $0x38] sm:$0xff]  ;;  %v94_v28 = vld [vmem:[#allocation5 + $0x50] sm:$0xff] }
  0x52   :  { %571 = vmatprep.subr.bf16.mxu1 %v797_v0  ;;  %v557_v27 = vpack.c.bf16 %v93_v23, %v92_v22  ;;  %v95_v29 = vld [vmem:[#allocation5 + $0x58] sm:$0xff]  ;;  %v578_v30 = vpack.c.bf16 %v185_v26, %v184_v25  ;;  %v186_v31 = vld [vmem:[#allocation7 + $0x40] sm:$0xff]  ;;  %v187_v32 = vld [vmem:[#allocation7 + $0x48] sm:$0xff] }
  0x53   :  { %549 = vmatpush3.bf16.msra.mxu0 %v548_v7  ;;  %v560_v33 = vpack.c.bf16 %v95_v29, %v94_v28  ;;  %v96_v34 = vld [vmem:[#allocation5 + $0x60] sm:$0xff]  ;;  %v97_v35 = vld [vmem:[#allocation5 + $0x68] sm:$0xff]  ;;  %v581_v36 = vpack.c.bf16 %v187_v32, %v186_v31  ;;  %v98_v38 = vld [vmem:[#allocation5 + $0x70] sm:$0xff] }
  0x54   :  { %550 = vmatprep.subr.bf16.mxu0 %v797_v0  ;;  %v563_v37 = vpack.c.bf16 %v97_v35, %v96_v34  ;;  %v99_v39 = vld [vmem:[#allocation5 + $0x78] sm:$0xff]  ;;  %v188_v42 = vld [vmem:[#allocation7 + $0x50] sm:$0xff]  ;;  %v190_v45 = vld [vmem:[#allocation7 + $0x60] sm:$0xff] }
  0x55   :  { %573 = vmatpush3.bf16.msra.mxu1 %v572_v18  ;;  %v566_v40 = vpack.c.bf16 %v99_v39, %v98_v38  ;;  %v83_v41 = vld [vmem:[#allocation2] sm:$0xff]  ;;  %v191_v46 = vld [vmem:[#allocation7 + $0x68] sm:$0xff]  ;;  %v192_v48 = vld [vmem:[#allocation7 + $0x70] sm:$0xff] }
  0x56   :  { %574 = vmatprep.subr.bf16.mxu1 %v797_v0  ;;  %v189_v43 = vld [vmem:[#allocation7 + $0x58] sm:$0xff]  ;;  %v587_v47 = vpack.c.bf16 %v191_v46, %v190_v45  ;;  %v273_v51 = vld [vmem:[#allocation8 + $0x8] sm:$0xff]  ;;  %v272_v53 = vld [vmem:[#allocation8] sm:$0xff]  ;;  %v306_v45 = vlaneseq }
  0x57   :  { %552 = vmatpush3.bf16.msra.mxu0 %v551_v14  ;;  %v584_v44 = vpack.c.bf16 %v189_v43, %v188_v42  ;;  %v193_v49 = vld [vmem:[#allocation7 + $0x78] sm:$0xff]  ;;  %v274_v55 = vld [vmem:[#allocation8 + $0x10] sm:$0xff]  ;;  %v277_v56 = vld [vmem:[#allocation8 + $0x28] sm:$0xff] }
  0x58   :  { %553 = vmatprep.subr.bf16.mxu0 %v797_v0  ;;  %v590_v50 = vpack.c.bf16 %v193_v49, %v192_v48  ;;  %v275_v52 = vld [vmem:[#allocation8 + $0x18] sm:$0xff]  ;;  %v594_v58 = vpack.c.bf16 %v274_v55, %v272_v53  ;;  %v276_v60 = vld [vmem:[#allocation8 + $0x20] sm:$0xff]  ;;  %v278_v61 = vld [vmem:[#allocation8 + $0x30] sm:$0xff]  ;;  %v307_v46 = vshrl.u32 %v306_v45, 7 }
  0x59   :  { %576 = vmatpush3.bf16.msra.mxu1 %v575_v24  ;;  %v592_v54 = vpack.c.bf16 %v275_v52, %v273_v51  ;;  %v279_v57 = vld [vmem:[#allocation8 + $0x38] sm:$0xff]  ;;  %v281_v62 = vld [vmem:[#allocation8 + $0x48] sm:$0xff]  ;;  %v282_v3 = vld [vmem:[#allocation8 + $0x50] sm:$0xff] }
  0x5a   :  { %577 = vmatprep.subr.bf16.mxu1 %v797_v0  ;;  %v596_v59 = vpack.c.bf16 %v279_v57, %v277_v56  ;;  %v283_v63 = vld [vmem:[#allocation8 + $0x58] sm:$0xff]  ;;  %v285_v4 = vld [vmem:[#allocation8 + $0x68] sm:$0xff]  ;;  %v284_v8 = vld [vmem:[#allocation8 + $0x60] sm:$0xff]  ;;  %v312_v49 = vsub.s32 1, %v307_v46 }
  0x5b   :  { %555 = vmatpush3.bf16.msra.mxu0 %v554_v21  ;;  %v600_v2 = vpack.c.bf16 %v283_v63, %v281_v62  ;;  %v287_v5 = vld [vmem:[#allocation8 + $0x78] sm:$0xff]  ;;  %v286_v9 = vld [vmem:[#allocation8 + $0x70] sm:$0xff]  ;;  %v289_v10 = vld [vmem:[#allocation8 + $0x88] sm:$0xff] }
  0x5c   :  { %556 = vmatprep.subr.bf16.mxu0 %v797_v0  ;;  %v604_v7 = vpack.c.bf16 %v287_v5, %v285_v4  ;;  %v291_v11 = vld [vmem:[#allocation8 + $0x98] sm:$0xff]  ;;  %v606_v12 = vpack.c.bf16 %v286_v9, %v284_v8  ;;  %v288_v14 = vld [vmem:[#allocation8 + $0x80] sm:$0xff]  ;;  %v290_v15 = vld [vmem:[#allocation8 + $0x90] sm:$0xff] }
  0x5d   :  { %579 = vmatpush3.bf16.msra.mxu1 %v578_v30  ;;  %v608_v13 = vpack.c.bf16 %v291_v11, %v289_v10  ;;  %v610_v16 = vpack.c.bf16 %v290_v15, %v288_v14  ;;  %v438_v17 = vld [vmem:[%s955_s2] ss:$0 sm:$0xff]  ;;  %v293_v22 = vld [vmem:[#allocation8 + $0xa8] sm:$0xff]  ;;  %v292_v25 = vld [vmem:[#allocation8 + $0xa0] sm:$0xff] }
  0x5e   :  { %580 = vmatprep.subr.bf16.mxu1 %v797_v0  ;;  %v295_v23 = vld [vmem:[#allocation8 + $0xb8] sm:$0xff]  ;;  %v294_v26 = vld [vmem:[#allocation8 + $0xb0] sm:$0xff]  ;;  %v297_v28 = vld [vmem:[#allocation8 + $0xc8] sm:$0xff] }
  0x5f   :  { %558 = vmatpush3.bf16.msra.mxu0 %v557_v27  ;;  %v612_v24 = vpack.c.bf16 %v295_v23, %v293_v22  ;;  %v614_v27 = vpack.c.bf16 %v294_v26, %v292_v25  ;;  %v299_v29 = vld [vmem:[#allocation8 + $0xd8] sm:$0xff]  ;;  %v296_v30 = vld [vmem:[#allocation8 + $0xc0] sm:$0xff]  ;;  %v298_v32 = vld [vmem:[#allocation8 + $0xd0] sm:$0xff] }
  0x60   :  { %559 = vmatprep.subr.bf16.mxu0 %v797_v0  ;;  %v616_v31 = vpack.c.bf16 %v299_v29, %v297_v28  ;;  %v303_v34 = vld [vmem:[#allocation8 + $0xf8] sm:$0xff]  ;;  %v618_v35 = vpack.c.bf16 %v298_v32, %v296_v30  ;;  %v302_v38 = vld [vmem:[#allocation8 + $0xf0] sm:$0xff] }
  0x61   :  { %582 = vmatpush3.bf16.msra.mxu1 %v581_v36  ;;  %v304_v48 = vld [vmem:[%s959_s6] sm:$0x3] }
  0x62   :  { %583 = vmatprep.subr.bf16.mxu1 %v797_v0  ;;  %v313_v51 = vrot.slane %v304_v48, %v312_v49 }
  0x63   :  { %561 = vmatpush3.bf16.msra.mxu0 %v560_v33  ;;  %v301_v33 = vld [vmem:[#allocation8 + $0xe8] sm:$0xff] }
  0x64   :  { %562 = vmatprep.subr.bf16.mxu0 %v797_v0  ;;  %v620_v36 = vpack.c.bf16 %v303_v34, %v301_v33 }
  0x65   :  { %585 = vmatpush3.bf16.msra.mxu1 %v584_v44 }
  0x66   :  { %586 = vmatprep.subr.bf16.mxu1 %v797_v0 }
  0x67   :  { %564 = vmatpush3.bf16.msra.mxu0 %v563_v37  ;;  %v300_v37 = vld [vmem:[#allocation8 + $0xe0] sm:$0xff] }
  0x68   :  { %565 = vmatprep.subr.bf16.mxu0 %v797_v0  ;;  %v622_v39 = vpack.c.bf16 %v302_v38, %v300_v37 }
  0x69   :  { %588 = vmatpush3.bf16.msra.mxu1 %v587_v47  ;;  %v308_v47 = vsub.s32 0, %v307_v46 }
  0x6a   :  { %589 = vmatprep.subr.bf16.mxu1 %v797_v0  ;;  %v280_v0 = vld [vmem:[#allocation8 + $0x40] sm:$0xff] }
  0x6b   :  { %567 = vmatpush3.bf16.msra.mxu0 %v566_v40  ;;  %v602_v6 = vpack.c.bf16 %v282_v3, %v280_v0  ;;  %v439_v40 = vld [vmem:[%s957_s4] ss:$0 sm:$0xff]  ;;  %s800_s4 = smov [#allocation10]  }
  0x6c   :  { %593 = vmatprep.subr.bf16.mxu0 %v592_v54  ;;  %s413_s13 = sshll.u32 %s800_s4, 4  ;;  %s414_s13 = int_to_ptr.vmem [resolvable:$true] %s413_s13 }
  0x6d   :  { %591 = vmatpush3.bf16.msra.mxu1 %v590_v50  ;;  %v309_v50 = vrot.slane %v304_v48, %v308_v47  ;;  %s735_s14 = scalar_lea.vmem %s414_s13, 128  ;;  %p740_p5 = scmp.lt.s32.totalorder %s414_s13, %s414_s13 }
  0x6e   :  { %507 = vmatmul.mubr.f32.vlgmr.msra.gmra.mrb[0].mxu0 %v83_v41  ;;  %p736_p4 = scmp.ne.s32.totalorder %s414_s13, %s735_s14  ;;  %p741_p6 = scmp.lt.s32.totalorder %s735_s14, %s735_s14 }
  0x6f   :  { %380 = vmatprep.mubr.f32.mxu0 %v799_v1  ;;  %595 = vmatpush1.bf16.msra.mxu0 %v594_v58  ;;  %v598_v1 = vpack.c.bf16 %v278_v61, %v276_v60 }
  0x70   :  { %597 = vmatprep.subr.bf16.mxu0 %v596_v59  ;;  %p742_p7 = por %p741_p6, %p740_p5 }
  0x72   :  { %p743_p8 = pnand %p742_p7, %p736_p4 }
  0x73   :  { %599 = vmatpush1.bf16.msra.mxu0 %v598_v1 }
  0x74   :  { %601 = vmatprep.subr.bf16.mxu0 %v600_v2 }
  0x77   :  { %603 = vmatpush1.bf16.msra.mxu0 %v602_v6 }
  0x78   :  { %605 = vmatprep.subr.bf16.mxu0 %v604_v7 }
  0x7b   :  { %607 = vmatpush1.bf16.msra.mxu0 %v606_v12 }
  0x7c   :  { %609 = vmatprep.subr.bf16.mxu0 %v608_v13 }
  0x7f   :  { %611 = vmatpush1.bf16.msra.mxu0 %v610_v16 }
  0x80   :  { %613 = vmatprep.subr.bf16.mxu0 %v612_v24 }
  0x83   :  { %615 = vmatpush1.bf16.msra.mxu0 %v614_v27 }
  0x84   :  { %617 = vmatprep.subr.bf16.mxu0 %v616_v31 }
  0x87   :  { %619 = vmatpush1.bf16.msra.mxu0 %v618_v35 }
  0x88   :  { %621 = vmatprep.subr.bf16.mxu0 %v620_v36 }
  0x8b   :  { %623 = vmatpush1.bf16.msra.mxu0 %v622_v39 }
 0x141   :  { %v173_v18 = vpop.f32.mrb[0].mxu0 }
 0x142   :  { %v174_v19 = vadd.f32 %v438_v17, %v173_v18  ;;  %v508_v20 = vpop.f32.mrb[1].mxu0 }
 0x144   :  { %637 = vtanh.f32 %v174_v19 }
 0x14e   :  { %v638_v21 = vpop.eup %637 }
 0x14f   :  { %542 = vmatmul.mubr.f32.vlgmr.msra.gmra.mrb[0].mxu1 %v638_v21 }
 0x222   :  { %v267_v41 = vpop.f32.mrb[0].mxu1 }
 0x223   :  { %v268_v42 = vadd.f32 %v439_v40, %v267_v41  ;;  %v543_v43 = vpop.f32.mrb[1].mxu1 }
 0x225   :  { %639 = vtanh.f32 %v268_v42 }
 0x22f   :  { %v640_v44 = vpop.eup %639 }
 0x230   :  { %381 = vmatmul.mubr.f32.vlgmr.msra.gmra.mrb[2].mxu0 %v640_v44 }
 0x303   :  { %v382_v52 = vpop.f32.mrb[2].mxu0 }
 0x304   :  { %v383_v53 = vadd.f32 %v382_v52, %v309_v50  ;;  %v384_v54 = vpop.f32.mrb[3].mxu0 }
 0x305   :  { %v385_v55 = vadd.f32 %v384_v54, %v313_v51 }
 0x306   :  { %641 = vtanh.f32 %v383_v53 }
 0x307   :  { %v389_v56 = vand.u32 2147483647, %v385_v55 }
 0x309   :  { %v390_v57 = vsub.f32 0.0, %v389_v56 }
 0x30b   :  { %v391_v58 = vmul.f32 1.442695, %v390_v57 }
 0x30d   :  { %643 = vpow2.f32 %v391_v58 }
 0x310   :  { %v642_v59 = vpop.eup %641 }
 0x311   :  { %405 = vst [vmem:[#allocation10] sm:$0xff] %v642_v59 }
 0x312   :  { %746 = shalt.err (!%p743_p8)
}
 0x313   :  { %s747_s18 = scalar_lea.hbm %s960_s7, 128 }
 0x314   :  { %p748_p9 = scmp.ne.s32.totalorder %s960_s7, %s747_s18  ;;  %p751_p10 = scmp.lt.u32.totalorder %s747_s18, %s960_s7 }
 0x316   :  { %p753_p11 = pnand %p751_p10, %p748_p9 }
 0x318   :  { %756 = shalt.err (!%p753_p11)
}
 0x319   :  { %416 = dma.vmem_to_hbm [thread:$0]  %s414_s13, 128, %s960_s7, [#allocation4]   ;;  %v644_v60 = vpop.eup %643  ;;  %v388_v4 = vmax.f32 %v385_v55, 0.0 }
 0x31a   :  { %v393_v61 = vadd.f32 1.0, %v644_v60  ;;  %v396_v62 = vmul.f32 -0.5, %v644_v60  ;;  %v399_v1 = vand.u32 2147483647, %v644_v60  ;;  %s801_s25 = smov [#allocation11]  }
 0x31b   :  { %s423_s26 = sshll.u32 %s801_s25, 4  ;;  %s424_s26 = int_to_ptr.vmem [resolvable:$true] %s423_s26 }
 0x31c   :  { %645 = vlog2.f32 %v393_v61  ;;  %v397_v63 = vadd.f32 1.0, %v396_v62  ;;  %vm400_vm1 = vcmp.lt.f32.partialorder %v399_v1, 0.0004427343  ;;  %s757_s7 = scalar_lea.vmem %s424_s26, 128  ;;  %p762_p13 = scmp.lt.s32.totalorder %s424_s26, %s424_s26 }
 0x31d   :  { %p758_p12 = scmp.ne.s32.totalorder %s424_s26, %s757_s7  ;;  %p763_p0 = scmp.lt.s32.totalorder %s757_s7, %s757_s7 }
 0x31e   :  { %v398_v3 = vmul.f32 %v644_v60, %v397_v63 }
 0x31f   :  { %p764_p1 = por %p763_p0, %p762_p13 }
 0x321   :  { %p765_p2 = pnand %p764_p1, %p758_p12 }
 0x326   :  { %v646_v2 = vpop.eup %645 }
 0x327   :  { %v395_v0 = vmul.f32 0.6931472, %v646_v2 }
 0x329   :  { %v401_v5 = vsel %vm400_vm1, %v398_v3, %v395_v0 }
 0x32a   :  { %v402_v6 = vadd.f32 %v401_v5, %v388_v4 }
 0x32c   :  { %v403_v7 = vmax.f32 %v402_v6, 2.0611537e-09 }
 0x32e   :  { %v404_v8 = vmin.f32 %v403_v7, 7.389056 }
 0x330   :  { %406 = vst [vmem:[#allocation11] sm:$0xff] %v404_v8 }
 0x331   :  { %768 = shalt.err (!%p765_p2)
}
 0x332   :  { %s769_s30 = scalar_lea.hbm %s961_s8, 128 }
 0x333   :  { %p770_p3 = scmp.ne.s32.totalorder %s961_s8, %s769_s30  ;;  %p773_p4 = scmp.lt.u32.totalorder %s769_s30, %s961_s8 }
 0x335   :  { %p775_p5 = pnand %p773_p4, %p770_p3 }
 0x337   :  { %778 = shalt.err (!%p775_p5)
}
 0x338   :  { %426 = dma.vmem_to_hbm [thread:$0]  %s424_s26, 128, %s961_s8, [#allocation12]  }
 0x339   :  { %785 = dma.done.wait [#allocation4], 128  }
 0x33a   :  { %786 = vsyncadd [#allocation4], 4294967168 }
 0x33b   :  { %787 = dma.done.wait [#allocation12], 128  }
 0x33c   :  { %788 = vsyncadd [#allocation12], 4294967168 }
 0x33d   :  { %433 = vsyncpa [#allocation3], 1 }
 0x33e   :  { %434 = vsyncpa [#allocation6], 1 }
 0x33f   :  { %435 = vsyncpa [#allocation9], 1 }
 0x340   :  { %436 = vsyncpa [#allocation4], 1 }
 0x341   :  { %437 = vsyncpa [#allocation12], 1 }

</bundles_post_ra>
